<compile_context>
chip_gen: v5e
topology: v5e:2x2
jax: 0.10.0
libtpu: 0.0.40
codegen_flags: <defaults>
</compile_context>

<pallas_src>
import functools

import jax
import jax.numpy as jnp
from jax import lax
from jax.experimental import pallas as pl
from jax.experimental.pallas import tpu as pltpu


def _round_up(x, m):
    return ((x + m - 1) // m) * m


def expert_kernel(x_ref, wg_ref, bg_ref, wu_ref, bu_ref, wd_ref, bd_ref,
                  o_ref, acc_ref):
    """One (token-tile, hidden-tile) step of the expert MLP."""
    n = pl.program_id(1)

    @pl.when(n == 0)
    def _():
        acc_ref[...] = jnp.zeros_like(acc_ref)

    x = x_ref[...]                                     # (tm, d_model), input dtype

    # gate/up projections for this hidden tile (MXU, f32 accumulation).
    gate = jnp.dot(x, wg_ref[...], preferred_element_type=jnp.float32) + bg_ref[...]
    up = jnp.dot(x, wu_ref[...], preferred_element_type=jnp.float32) + bu_ref[...]

    # SwiGLU gating in f32:  gate * silu(up)   (EUP sigmoid + VPU muls)
    h = gate * (up * jax.nn.sigmoid(up))               # (tm, tn) f32

    # Partial down projection, accumulated over hidden tiles.
    acc_ref[...] += jnp.dot(h.astype(x.dtype), wd_ref[...],
                            preferred_element_type=jnp.float32)

    @pl.when(n == pl.num_programs(1) - 1)
    def _():
        o_ref[...] = (acc_ref[...] + bd_ref[...]).astype(o_ref.dtype)


@functools.partial(jax.jit, static_argnames=("tm", "tn"))
def expert_forward(x, wg_t, bg, wu_t, bu, wd_t, bd, *, tm=256, tn=512):
    """x: (tokens, d_model).  Weights pre-transposed to (in, out); biases (out,)."""
    M, d_model = x.shape
    hidden = wg_t.shape[1]
    assert wg_t.shape == (d_model, hidden)
    assert wu_t.shape == (d_model, hidden)
    assert wd_t.shape == (hidden, d_model)
    assert d_model % 128 == 0, "d_model must be a multiple of 128 (lane dim)"
    assert hidden % 128 == 0, "hidden_dim must be a multiple of 128 (lane dim)"

    # Sublane granularity: 8 rows for 4-byte dtypes, 16 for 2-byte (bf16).
    sub = 8 if jnp.dtype(x.dtype).itemsize == 4 else 16

    # Token tile: as large as requested but no larger than the padded M.
    tm = min(tm, _round_up(M, sub))
    tm = _round_up(tm, sub)
    M_pad = _round_up(M, tm)
    if M_pad != M:
        x = jnp.pad(x, ((0, M_pad - M), (0, 0)))       # ragged token counts: pad + slice

    # Hidden tile: multiple of 128 that evenly divides hidden.
    tn = _round_up(min(tn, hidden), 128)
    while hidden % tn:
        tn -= 128

    grid = (M_pad // tm, hidden // tn)

    bg2 = bg.reshape(1, hidden)
    bu2 = bu.reshape(1, hidden)
    bd2 = bd.reshape(1, d_model)

    # VMEM budget hint: double-buffered weight/activation tiles + f32 accumulator.
    itm = jnp.dtype(x.dtype).itemsize
    wit = jnp.dtype(wg_t.dtype).itemsize
    per_step = (tm * d_model * itm                       # x tile
                + 2 * d_model * tn * wit                 # Wg, Wu tiles
                + tn * d_model * wit                     # Wd tile
                + (2 * tn + d_model) * wit               # biases
                + tm * d_model * itm)                    # out tile
    vmem_limit = int(min(100 * 1024 * 1024,
                         max(32 * 1024 * 1024,
                             2 * per_step + tm * d_model * 4 + (1 << 20))))

    cost = pl.CostEstimate(
        flops=6 * M_pad * d_model * hidden,              # gate + up + down matmuls
        transcendentals=M_pad * hidden,                  # sigmoid
        bytes_accessed=(2 * M_pad * d_model * itm
                        + 3 * d_model * hidden * wit
                        + (2 * hidden + d_model) * wit),
    )

    out = pl.pallas_call(
        expert_kernel,
        out_shape=jax.ShapeDtypeStruct((M_pad, d_model), x.dtype),
        grid_spec=pltpu.PrefetchScalarGridSpec(
            num_scalar_prefetch=0,
            grid=grid,
            in_specs=[
                pl.BlockSpec((tm, d_model), lambda i, n: (i, 0)),   # x tile (resident over n)
                pl.BlockSpec((d_model, tn), lambda i, n: (0, n)),   # Wg^T tile
                pl.BlockSpec((1, tn), lambda i, n: (0, n)),         # bg tile
                pl.BlockSpec((d_model, tn), lambda i, n: (0, n)),   # Wu^T tile
                pl.BlockSpec((1, tn), lambda i, n: (0, n)),         # bu tile
                pl.BlockSpec((tn, d_model), lambda i, n: (n, 0)),   # Wd^T tile
                pl.BlockSpec((1, d_model), lambda i, n: (0, 0)),    # bd
            ],
            out_specs=pl.BlockSpec((tm, d_model), lambda i, n: (i, 0)),
            scratch_shapes=[pltpu.VMEM((tm, d_model), jnp.float32)],
        ),
        compiler_params=pltpu.CompilerParams(
            dimension_semantics=("parallel", "arbitrary"),
            vmem_limit_bytes=vmem_limit,
        ),
        cost_estimate=cost,
    )(x, wg_t, bg2, wu_t, bu2, wd_t, bd2)

    return out[:M]


def _init_linear_t(key, in_features, out_features, dtype=jnp.float32):
    """nn.Linear-style init, but weight stored pre-transposed as (in, out)."""
    kw, kb = jax.random.split(key)
    bound = 1.0 / (in_features ** 0.5)
    w_t = jax.random.uniform(kw, (in_features, out_features), dtype, -bound, bound)
    b = jax.random.uniform(kb, (out_features,), dtype, -bound, bound)
    return w_t, b


if __name__ == "__main__":
    batch, seq, d_model, hidden = 2, 8, 128, 256
    key = jax.random.PRNGKey(0)
    kx, kg, ku, kd = jax.random.split(key, 4)

    x = jax.random.normal(kx, (batch, seq, d_model), jnp.float32)

    wg_t, bg = _init_linear_t(kg, d_model, hidden)   # gate_proj  (stored (in,out))
    wu_t, bu = _init_linear_t(ku, d_model, hidden)   # up_proj
    wd_t, bd = _init_linear_t(kd, hidden, d_model)   # down_proj

    # Flatten (batch, seq) -> tokens for the kernel, reshape back after.
    x2d = x.reshape(batch * seq, d_model)
    out2d = expert_forward(x2d, wg_t, bg, wu_t, bu, wd_t, bd)
    out = out2d.reshape(batch, seq, d_model)
    jax.block_until_ready(out)

    # Pure-JAX reference (full-precision matmuls) for correctness.
    prec = lax.Precision.HIGHEST
    gate_ref = jnp.dot(x2d, wg_t, precision=prec) + bg
    up_ref = jnp.dot(x2d, wu_t, precision=prec) + bu
    h_ref = gate_ref * (up_ref * jax.nn.sigmoid(up_ref))
    ref = (jnp.dot(h_ref, wd_t, precision=prec) + bd).reshape(batch, seq, d_model)

    assert out.shape == (batch, seq, d_model)
    max_err = float(jnp.max(jnp.abs(out - ref)))
    # Loose tolerance: in-kernel MXU matmul precision may differ from HIGHEST.
    assert max_err < 2e-2, max_err
    print("KERNEL_OK")
</pallas_src>

<mosaic_0001>
module attributes {stable_mosaic.version = 11 : i64} {
  func.func @expert_kernel(%arg0: i32, %arg1: i32, %arg2: memref<16x128xf32, #tpu.memory_space<vmem>>, %arg3: memref<128x256xf32, #tpu.memory_space<vmem>>, %arg4: memref<1x256xf32, #tpu.memory_space<vmem>>, %arg5: memref<128x256xf32, #tpu.memory_space<vmem>>, %arg6: memref<1x256xf32, #tpu.memory_space<vmem>>, %arg7: memref<256x128xf32, #tpu.memory_space<vmem>>, %arg8: memref<1x128xf32, #tpu.memory_space<vmem>>, %arg9: memref<16x128xf32, #tpu.memory_space<vmem>>, %arg10: memref<16x128xf32, #tpu.memory_space<vmem>>) attributes {dimension_semantics = [#tpu.dimension_semantics<parallel>, #tpu.dimension_semantics<arbitrary>], iteration_bounds = array<i64: 1, 1>, scalar_prefetch = 0 : i64, scratch_operands = 1 : i64, tpu.core_type = #tpu.core_type<tc>, window_params = [{transform_indices = @transform_0, window_bounds = array<i64: 16, 128>}, {transform_indices = @transform_1, window_bounds = array<i64: 128, 256>}, {transform_indices = @transform_2, window_bounds = array<i64: 1, 256>}, {transform_indices = @transform_3, window_bounds = array<i64: 128, 256>}, {transform_indices = @transform_4, window_bounds = array<i64: 1, 256>}, {transform_indices = @transform_5, window_bounds = array<i64: 256, 128>}, {pipeline_mode = #tpu.pipeline_mode<synchronous>, transform_indices = @transform_6, window_bounds = array<i64: 1, 128>}, {transform_indices = @transform_7, window_bounds = array<i64: 16, 128>}]} {
    %c0_i32 = arith.constant 0 : i32
    %0 = arith.cmpi eq, %arg1, %c0_i32 : i32
    %1 = arith.extui %0 : i1 to i32
    %c0_i32_0 = arith.constant 0 : i32
    %2 = arith.cmpi ne, %1, %c0_i32_0 : i32
    scf.if %2 {
      %cst_21 = arith.constant 0.000000e+00 : f32
      %29 = vector.broadcast %cst_21 : f32 to vector<16x128xf32>
      %c0_22 = arith.constant 0 : index
      %c0_23 = arith.constant 0 : index
      %30 = vector.load %arg10[%c0_22, %c0_23] : memref<16x128xf32, #tpu.memory_space<vmem>>, vector<16x128xf32>
      tpu.vector_store %arg10[%c0_22, %c0_23], %29 {strides = array<i32>} : memref<16x128xf32, #tpu.memory_space<vmem>>, vector<16x128xf32>,
    } else {
    }
    %c0 = arith.constant 0 : index
    %c0_1 = arith.constant 0 : index
    %3 = vector.load %arg2[%c0, %c0_1] : memref<16x128xf32, #tpu.memory_space<vmem>>, vector<16x128xf32>
    %c0_2 = arith.constant 0 : index
    %c0_3 = arith.constant 0 : index
    %4 = vector.load %arg3[%c0_2, %c0_3] : memref<128x256xf32, #tpu.memory_space<vmem>>, vector<128x256xf32>
    %cst = arith.constant dense<0.000000e+00> : vector<16x256xf32>
    %5 = tpu.matmul %3, %4, %cst {dimension_numbers = #tpu.dot_dimension_numbers<[1], [0], [0], [1], [0, 0, 1, 1], [], []>} : vector<16x128xf32>, vector<128x256xf32>, vector<16x256xf32> -> vector<16x256xf32>
    %c0_4 = arith.constant 0 : index
    %c0_5 = arith.constant 0 : index
    %6 = vector.load %arg4[%c0_4, %c0_5] : memref<1x256xf32, #tpu.memory_space<vmem>>, vector<1x256xf32>
    %7 = vector.broadcast %6 : vector<1x256xf32> to vector<16x256xf32>
    %8 = arith.addf %5, %7 : vector<16x256xf32>
    %c0_6 = arith.constant 0 : index
    %c0_7 = arith.constant 0 : index
    %9 = vector.load %arg5[%c0_6, %c0_7] : memref<128x256xf32, #tpu.memory_space<vmem>>, vector<128x256xf32>
    %cst_8 = arith.constant dense<0.000000e+00> : vector<16x256xf32>
    %10 = tpu.matmul %3, %9, %cst_8 {dimension_numbers = #tpu.dot_dimension_numbers<[1], [0], [0], [1], [0, 0, 1, 1], [], []>} : vector<16x128xf32>, vector<128x256xf32>, vector<16x256xf32> -> vector<16x256xf32>
    %c0_9 = arith.constant 0 : index
    %c0_10 = arith.constant 0 : index
    %11 = vector.load %arg6[%c0_9, %c0_10] : memref<1x256xf32, #tpu.memory_space<vmem>>, vector<1x256xf32>
    %12 = vector.broadcast %11 : vector<1x256xf32> to vector<16x256xf32>
    %13 = arith.addf %10, %12 : vector<16x256xf32>
    %14 = arith.negf %13 : vector<16x256xf32>
    %15 = math.exp %14 : vector<16x256xf32>
    %cst_11 = arith.constant 1.000000e+00 : f32
    %16 = vector.broadcast %cst_11 : f32 to vector<16x256xf32>
    %17 = arith.addf %16, %15 : vector<16x256xf32>
    %18 = arith.divf %16, %17 : vector<16x256xf32>
    %19 = arith.mulf %13, %18 : vector<16x256xf32>
    %20 = arith.mulf %8, %19 : vector<16x256xf32>
    %c0_12 = arith.constant 0 : index
    %c0_13 = arith.constant 0 : index
    %21 = vector.load %arg10[%c0_12, %c0_13] : memref<16x128xf32, #tpu.memory_space<vmem>>, vector<16x128xf32>
    %c0_14 = arith.constant 0 : index
    %c0_15 = arith.constant 0 : index
    %22 = vector.load %arg7[%c0_14, %c0_15] : memref<256x128xf32, #tpu.memory_space<vmem>>, vector<256x128xf32>
    %cst_16 = arith.constant dense<0.000000e+00> : vector<16x128xf32>
    %23 = tpu.matmul %20, %22, %cst_16 {dimension_numbers = #tpu.dot_dimension_numbers<[1], [0], [0], [1], [0, 0, 1, 1], [], []>} : vector<16x256xf32>, vector<256x128xf32>, vector<16x128xf32> -> vector<16x128xf32>
    %24 = arith.addf %21, %23 : vector<16x128xf32>
    %c0_17 = arith.constant 0 : index
    %c0_18 = arith.constant 0 : index
    %25 = vector.load %arg10[%c0_17, %c0_18] : memref<16x128xf32, #tpu.memory_space<vmem>>, vector<16x128xf32>
    tpu.vector_store %arg10[%c0_17, %c0_18], %24 {strides = array<i32>} : memref<16x128xf32, #tpu.memory_space<vmem>>, vector<16x128xf32>,
    %c0_i32_19 = arith.constant 0 : i32
    %26 = arith.cmpi eq, %arg1, %c0_i32_19 : i32
    %27 = arith.extui %26 : i1 to i32
    %c0_i32_20 = arith.constant 0 : i32
    %28 = arith.cmpi ne, %27, %c0_i32_20 : i32
    scf.if %28 {
      %c0_21 = arith.constant 0 : index
      %c0_22 = arith.constant 0 : index
      %29 = vector.load %arg10[%c0_21, %c0_22] : memref<16x128xf32, #tpu.memory_space<vmem>>, vector<16x128xf32>
      %c0_23 = arith.constant 0 : index
      %c0_24 = arith.constant 0 : index
      %30 = vector.load %arg8[%c0_23, %c0_24] : memref<1x128xf32, #tpu.memory_space<vmem>>, vector<1x128xf32>
      %31 = vector.broadcast %30 : vector<1x128xf32> to vector<16x128xf32>
      %32 = arith.addf %29, %31 : vector<16x128xf32>
      %c0_25 = arith.constant 0 : index
      %c0_26 = arith.constant 0 : index
      %33 = vector.load %arg9[%c0_25, %c0_26] : memref<16x128xf32, #tpu.memory_space<vmem>>, vector<16x128xf32>
      tpu.vector_store %arg9[%c0_25, %c0_26], %32 {strides = array<i32>} : memref<16x128xf32, #tpu.memory_space<vmem>>, vector<16x128xf32>,
    } else {
    }
    return
  }
  func.func @transform_0(%arg0: i32, %arg1: i32) -> (i32, i32) {
    %c0_i32 = arith.constant 0 : i32
    %c0_i32_0 = arith.constant 0 : i32
    return %arg0, %c0_i32 : i32, i32
  }
  func.func @transform_1(%arg0: i32, %arg1: i32) -> (i32, i32) {
    %c0_i32 = arith.constant 0 : i32
    %c0_i32_0 = arith.constant 0 : i32
    return %c0_i32, %arg1 : i32, i32
  }
  func.func @transform_2(%arg0: i32, %arg1: i32) -> (i32, i32) {
    %c0_i32 = arith.constant 0 : i32
    %c0_i32_0 = arith.constant 0 : i32
    return %c0_i32, %arg1 : i32, i32
  }
  func.func @transform_3(%arg0: i32, %arg1: i32) -> (i32, i32) {
    %c0_i32 = arith.constant 0 : i32
    %c0_i32_0 = arith.constant 0 : i32
    return %c0_i32, %arg1 : i32, i32
  }
  func.func @transform_4(%arg0: i32, %arg1: i32) -> (i32, i32) {
    %c0_i32 = arith.constant 0 : i32
    %c0_i32_0 = arith.constant 0 : i32
    return %c0_i32, %arg1 : i32, i32
  }
  func.func @transform_5(%arg0: i32, %arg1: i32) -> (i32, i32) {
    %c0_i32 = arith.constant 0 : i32
    %c0_i32_0 = arith.constant 0 : i32
    return %arg1, %c0_i32 : i32, i32
  }
  func.func @transform_6(%arg0: i32, %arg1: i32) -> (i32, i32) {
    %c0_i32 = arith.constant 0 : i32
    %c0_i32_0 = arith.constant 0 : i32
    %c0_i32_1 = arith.constant 0 : i32
    return %c0_i32, %c0_i32_0 : i32, i32
  }
  func.func @transform_7(%arg0: i32, %arg1: i32) -> (i32, i32) {
    %c0_i32 = arith.constant 0 : i32
    %c0_i32_0 = arith.constant 0 : i32
    return %arg0, %c0_i32 : i32, i32
  }
}

</mosaic_0001>

<bundles_post_ra>
// kernel: expert_forward.1
= control target key start
LH: loop header
LB: loop body
LE: loop exit
PB: predicated region body
PF: predicated region fallthrough
CT: control target
= control target key end

     0   :  { %12 = vsyncpa [#allocation4], 0  ;;  %s774_s0 = inlined_call_operand.hbm [shape: f32[16,128], index: 0, kind: input, shape index: {}]   ;;  %s775_s1 = inlined_call_operand.hbm [shape: f32[128,256], index: 1, kind: input, shape index: {}]   ;;  %s776_s2 = inlined_call_operand.vmem [shape: f32[1,256], index: 2, kind: input, shape index: {}]   ;;  %s777_s3 = inlined_call_operand.hbm [shape: f32[128,256], index: 3, kind: input, shape index: {}]   ;;  %s778_s4 = inlined_call_operand.vmem [shape: f32[1,256], index: 4, kind: input, shape index: {}]   ;;  %s779_s5 = inlined_call_operand.hbm [shape: f32[256,128], index: 5, kind: input, shape index: {}]   ;;  %s780_s6 = inlined_call_operand.vmem [shape: f32[1,128], index: 6, kind: input, shape index: {}]   ;;  %s781_s7 = inlined_call_operand.hbm [shape: f32[16,128], index: 7, kind: output, shape index: {}]  }
   0x1   :  { %13 = vsyncpa [#allocation7], 0 }
   0x2   :  { %14 = vsyncpa [#allocation10], 0  ;;  %s33_s26 = sshll.u32 %s775_s1, 4  ;;  %s34_s26 = int_to_ptr.hbm [resolvable:$true] %s33_s26 }
   0x3   :  { %15 = vsyncpa [#allocation5], 0  ;;  %s658_s27 = smov [#allocation6]   ;;  %s20_s8 = sshll.u32 %s774_s0, 4  ;;  %s21_s8 = int_to_ptr.hbm [resolvable:$true] %s20_s8 }
   0x4   :  { %s35_s28 = sshll.u32 %s658_s27, 4  ;;  %s659_s9 = smov 256   ;;  %s36_s28 = int_to_ptr.vmem [resolvable:$true] %s35_s28 }
   0x5   :  { %s660_s10 = smov 16   ;;  %s661_s11 = smov [#allocation3]  }
   0x6   :  { %41 = dma.hbm_to_vmem [thread:$0]  %s34_s26, 4096, %s36_s28, [#allocation7], %s659_s9, %s659_s9, %s660_s10  }
   0x7   :  { %s22_s12 = sshll.u32 %s661_s11, 4  ;;  %s662_s13 = smov 128   ;;  %s23_s12 = int_to_ptr.vmem [resolvable:$true] %s22_s12 }
   0x8   :  { %s663_s14 = smov 8   ;;  %s48_s16 = sshll.u32 %s777_s3, 4  ;;  %s49_s16 = int_to_ptr.hbm [resolvable:$true] %s48_s16 }
   0x9   :  { %28 = dma.hbm_to_vmem [thread:$0]  %s21_s8, 256, %s23_s12, [#allocation4], %s662_s13, %s662_s13, %s663_s14  }
   0xa   :  { %s664_s17 = smov [#allocation8]   ;;  %s63_s20 = sshll.u32 %s779_s5, 4  ;;  %s64_s20 = int_to_ptr.hbm [resolvable:$true] %s63_s20 }
   0xb   :  { %s50_s0 = sshll.u32 %s664_s17, 4  ;;  %s665_s21 = smov [#allocation9]   ;;  %s51_s0 = int_to_ptr.vmem [resolvable:$true] %s50_s0 }
   0xc   :  { %56 = dma.hbm_to_vmem [thread:$0]  %s49_s16, 4096, %s51_s0, [#allocation7], %s659_s9, %s659_s9, %s660_s10  }
   0xd   :  { %s65_s22 = sshll.u32 %s665_s21, 4  ;;  %s66_s22 = int_to_ptr.vmem [resolvable:$true] %s65_s22 }
   0xe   :  { %71 = dma.hbm_to_vmem [thread:$0]  %s64_s20, 4096, %s66_s22, [#allocation10], %s662_s13, %s662_s13, %s663_s14  }
   0xf   :  { %650 = dma.done.wait [#allocation4], 256  }
  0x10   :  { %651 = vsyncadd [#allocation4], 4294967040 }
  0x11   :  { %652 = dma.done.wait [#allocation7], 8192  }
  0x12   :  { %653 = vsyncadd [#allocation7], 4294959104 }
  0x13   :  { %654 = dma.done.wait [#allocation10], 4096  }
  0x14   :  { %655 = vsyncadd [#allocation10], 4294963200  ;;  %v212_v0 = vld [vmem:[#allocation8 + $0xf0] sm:$0xff]  ;;  %v213_v1 = vld [vmem:[#allocation8 + $0xf8] sm:$0xff]  ;;  %s666_s25 = smov [#allocation11]   ;;  %s453_s29 = sshll.u32 %s781_s7, 4  ;;  %s454_s29 = int_to_ptr.hbm [resolvable:$true] %s453_s29 }
  0x15   :  { %v210_v2 = vld [vmem:[#allocation8 + $0xe0] sm:$0xff]  ;;  %220 = vmatpush.msra.mxu2 %v212_v0  ;;  %243 = vmatpush.msra.mxu3 %v213_v1  ;;  %v211_v3 = vld [vmem:[#allocation8 + $0xe8] sm:$0xff]  ;;  %v208_v4 = vld [vmem:[#allocation8 + $0xd0] sm:$0xff]  ;;  %s451_s26 = sshll.u32 %s666_s25, 4  ;;  %s452_s26 = int_to_ptr.vmem [resolvable:$true] %s451_s26 }
  0x16   :  { %v209_v5 = vld [vmem:[#allocation8 + $0xd8] sm:$0xff]  ;;  %v206_v6 = vld [vmem:[#allocation8 + $0xc0] sm:$0xff]  ;;  %v207_v7 = vld [vmem:[#allocation8 + $0xc8] sm:$0xff] }
  0x17   :  { %221 = vmatpush.msra.mxu2 %v210_v2  ;;  %244 = vmatpush.msra.mxu3 %v211_v3  ;;  %v204_v8 = vld [vmem:[#allocation8 + $0xb0] sm:$0xff]  ;;  %v205_v9 = vld [vmem:[#allocation8 + $0xb8] sm:$0xff]  ;;  %v202_v10 = vld [vmem:[#allocation8 + $0xa0] sm:$0xff] }
  0x18   :  { %v203_v11 = vld [vmem:[#allocation8 + $0xa8] sm:$0xff]  ;;  %v200_v12 = vld [vmem:[#allocation8 + $0x90] sm:$0xff]  ;;  %v201_v13 = vld [vmem:[#allocation8 + $0x98] sm:$0xff] }
  0x19   :  { %222 = vmatpush.msra.mxu2 %v208_v4  ;;  %245 = vmatpush.msra.mxu3 %v209_v5  ;;  %v128_v14 = vld [vmem:[#allocation6 + $0xf0] sm:$0xff]  ;;  %v129_v15 = vld [vmem:[#allocation6 + $0xf8] sm:$0xff]  ;;  %v126_v16 = vld [vmem:[#allocation6 + $0xe0] sm:$0xff] }
  0x1a   :  { %v198_v17 = vld [vmem:[#allocation8 + $0x80] sm:$0xff]  ;;  %v199_v18 = vld [vmem:[#allocation8 + $0x88] sm:$0xff]  ;;  %136 = vmatpush.msra.mxu0 %v128_v14  ;;  %159 = vmatpush.msra.mxu1 %v129_v15  ;;  %v124_v20 = vld [vmem:[#allocation6 + $0xd0] sm:$0xff] }
  0x1b   :  { %223 = vmatpush.msra.mxu2 %v206_v6  ;;  %246 = vmatpush.msra.mxu3 %v207_v7  ;;  %v127_v19 = vld [vmem:[#allocation6 + $0xe8] sm:$0xff]  ;;  %v125_v21 = vld [vmem:[#allocation6 + $0xd8] sm:$0xff]  ;;  %v196_v22 = vld [vmem:[#allocation8 + $0x70] sm:$0xff] }
  0x1c   :  { %v197_v23 = vld [vmem:[#allocation8 + $0x78] sm:$0xff]  ;;  %137 = vmatpush.msra.mxu0 %v126_v16  ;;  %160 = vmatpush.msra.mxu1 %v127_v19  ;;  %v122_v24 = vld [vmem:[#allocation6 + $0xc0] sm:$0xff]  ;;  %v123_v25 = vld [vmem:[#allocation6 + $0xc8] sm:$0xff] }
  0x1d   :  { %224 = vmatpush.msra.mxu2 %v204_v8  ;;  %247 = vmatpush.msra.mxu3 %v205_v9  ;;  %v194_v26 = vld [vmem:[#allocation8 + $0x60] sm:$0xff]  ;;  %v195_v27 = vld [vmem:[#allocation8 + $0x68] sm:$0xff]  ;;  %v120_v28 = vld [vmem:[#allocation6 + $0xb0] sm:$0xff] }
  0x1e   :  { %138 = vmatpush.msra.mxu0 %v124_v20  ;;  %161 = vmatpush.msra.mxu1 %v125_v21  ;;  %v121_v29 = vld [vmem:[#allocation6 + $0xb8] sm:$0xff]  ;;  %v192_v30 = vld [vmem:[#allocation8 + $0x50] sm:$0xff]  ;;  %v118_v32 = vld [vmem:[#allocation6 + $0xa0] sm:$0xff] }
  0x1f   :  { %225 = vmatpush.msra.mxu2 %v202_v10  ;;  %248 = vmatpush.msra.mxu3 %v203_v11  ;;  %v193_v31 = vld [vmem:[#allocation8 + $0x58] sm:$0xff]  ;;  %v119_v33 = vld [vmem:[#allocation6 + $0xa8] sm:$0xff]  ;;  %v190_v34 = vld [vmem:[#allocation8 + $0x40] sm:$0xff] }
  0x20   :  { %139 = vmatpush.msra.mxu0 %v122_v24  ;;  %162 = vmatpush.msra.mxu1 %v123_v25  ;;  %v191_v35 = vld [vmem:[#allocation8 + $0x48] sm:$0xff]  ;;  %v116_v36 = vld [vmem:[#allocation6 + $0x90] sm:$0xff]  ;;  %v117_v37 = vld [vmem:[#allocation6 + $0x98] sm:$0xff] }
  0x21   :  { %226 = vmatpush.msra.mxu2 %v200_v12  ;;  %249 = vmatpush.msra.mxu3 %v201_v13  ;;  %v188_v38 = vld [vmem:[#allocation8 + $0x30] sm:$0xff]  ;;  %v189_v39 = vld [vmem:[#allocation8 + $0x38] sm:$0xff]  ;;  %v114_v40 = vld [vmem:[#allocation6 + $0x80] sm:$0xff] }
  0x22   :  { %140 = vmatpush.msra.mxu0 %v120_v28  ;;  %163 = vmatpush.msra.mxu1 %v121_v29  ;;  %v115_v41 = vld [vmem:[#allocation6 + $0x88] sm:$0xff]  ;;  %v186_v42 = vld [vmem:[#allocation8 + $0x20] sm:$0xff]  ;;  %v112_v44 = vld [vmem:[#allocation6 + $0x70] sm:$0xff] }
  0x23   :  { %227 = vmatpush.msra.mxu2 %v198_v17  ;;  %250 = vmatpush.msra.mxu3 %v199_v18  ;;  %v187_v43 = vld [vmem:[#allocation8 + $0x28] sm:$0xff]  ;;  %v113_v45 = vld [vmem:[#allocation6 + $0x78] sm:$0xff]  ;;  %v184_v46 = vld [vmem:[#allocation8 + $0x10] sm:$0xff] }
  0x24   :  { %141 = vmatpush.msra.mxu0 %v118_v32  ;;  %164 = vmatpush.msra.mxu1 %v119_v33  ;;  %v185_v47 = vld [vmem:[#allocation8 + $0x18] sm:$0xff]  ;;  %v110_v48 = vld [vmem:[#allocation6 + $0x60] sm:$0xff]  ;;  %v111_v49 = vld [vmem:[#allocation6 + $0x68] sm:$0xff] }
  0x25   :  { %228 = vmatpush.msra.mxu2 %v196_v22  ;;  %251 = vmatpush.msra.mxu3 %v197_v23  ;;  %v182_v50 = vld [vmem:[#allocation8] sm:$0xff]  ;;  %v183_v51 = vld [vmem:[#allocation8 + $0x8] sm:$0xff]  ;;  %v96_v52 = vld [vmem:[#allocation3] sm:$0xff] }
  0x26   :  { %142 = vmatpush.msra.mxu0 %v116_v36  ;;  %165 = vmatpush.msra.mxu1 %v117_v37  ;;  %v108_v53 = vld [vmem:[#allocation6 + $0x50] sm:$0xff]  ;;  %v109_v54 = vld [vmem:[#allocation6 + $0x58] sm:$0xff]  ;;  %v106_v55 = vld [vmem:[#allocation6 + $0x40] sm:$0xff] }
  0x27   :  { %229 = vmatpush.msra.mxu2 %v194_v26  ;;  %252 = vmatpush.msra.mxu3 %v195_v27  ;;  %v107_v56 = vld [vmem:[#allocation6 + $0x48] sm:$0xff]  ;;  %v104_v57 = vld [vmem:[#allocation6 + $0x30] sm:$0xff]  ;;  %v105_v58 = vld [vmem:[#allocation6 + $0x38] sm:$0xff] }
  0x28   :  { %143 = vmatpush.msra.mxu0 %v114_v40  ;;  %166 = vmatpush.msra.mxu1 %v115_v41  ;;  %v102_v59 = vld [vmem:[#allocation6 + $0x20] sm:$0xff]  ;;  %v103_v60 = vld [vmem:[#allocation6 + $0x28] sm:$0xff]  ;;  %v97_v61 = vld [vmem:[#allocation3 + $0x8] sm:$0xff] }
  0x29   :  { %230 = vmatpush.msra.mxu2 %v192_v30  ;;  %253 = vmatpush.msra.mxu3 %v193_v31  ;;  %v100_v62 = vld [vmem:[#allocation6 + $0x10] sm:$0xff]  ;;  %v101_v63 = vld [vmem:[#allocation6 + $0x18] sm:$0xff]  ;;  %v98_v0 = vld [vmem:[#allocation6] sm:$0xff] }
  0x2a   :  { %144 = vmatpush.msra.mxu0 %v112_v44  ;;  %167 = vmatpush.msra.mxu1 %v113_v45  ;;  %v99_v1 = vld [vmem:[#allocation6 + $0x8] sm:$0xff]  ;;  %v367_v2 = vld [vmem:[#allocation9 + $0x78] sm:$0xff]  ;;  %v366_v4 = vld [vmem:[#allocation9 + $0x70] sm:$0xff] }
  0x2b   :  { %231 = vmatpush.msra.mxu2 %v190_v34  ;;  %254 = vmatpush.msra.mxu3 %v191_v35  ;;  %v383_v3 = vld [vmem:[#allocation9 + $0xf8] sm:$0xff]  ;;  %v382_v5 = vld [vmem:[#allocation9 + $0xf0] sm:$0xff]  ;;  %v365_v6 = vld [vmem:[#allocation9 + $0x68] sm:$0xff] }
  0x2c   :  { %145 = vmatpush.msra.mxu0 %v110_v48  ;;  %168 = vmatpush.msra.mxu1 %v111_v49  ;;  %v381_v7 = vld [vmem:[#allocation9 + $0xe8] sm:$0xff]  ;;  %v364_v8 = vld [vmem:[#allocation9 + $0x60] sm:$0xff]  ;;  %v363_v10 = vld [vmem:[#allocation9 + $0x58] sm:$0xff] }
  0x2d   :  { %232 = vmatpush.msra.mxu2 %v188_v38  ;;  %255 = vmatpush.msra.mxu3 %v189_v39  ;;  %v380_v9 = vld [vmem:[#allocation9 + $0xe0] sm:$0xff]  ;;  %v379_v11 = vld [vmem:[#allocation9 + $0xd8] sm:$0xff]  ;;  %v362_v12 = vld [vmem:[#allocation9 + $0x50] sm:$0xff] }
  0x2e   :  { %146 = vmatpush.msra.mxu0 %v108_v53  ;;  %169 = vmatpush.msra.mxu1 %v109_v54  ;;  %v378_v13 = vld [vmem:[#allocation9 + $0xd0] sm:$0xff]  ;;  %v361_v14 = vld [vmem:[#allocation9 + $0x48] sm:$0xff]  ;;  %v360_v16 = vld [vmem:[#allocation9 + $0x40] sm:$0xff] }
  0x2f   :  { %233 = vmatpush.msra.mxu2 %v186_v42  ;;  %256 = vmatpush.msra.mxu3 %v187_v43  ;;  %v377_v15 = vld [vmem:[#allocation9 + $0xc8] sm:$0xff]  ;;  %v376_v17 = vld [vmem:[#allocation9 + $0xc0] sm:$0xff]  ;;  %v359_v18 = vld [vmem:[#allocation9 + $0x38] sm:$0xff] }
  0x30   :  { %147 = vmatpush.msra.mxu0 %v106_v55  ;;  %170 = vmatpush.msra.mxu1 %v107_v56  ;;  %v375_v19 = vld [vmem:[#allocation9 + $0xb8] sm:$0xff]  ;;  %v358_v20 = vld [vmem:[#allocation9 + $0x30] sm:$0xff]  ;;  %v357_v23 = vld [vmem:[#allocation9 + $0x28] sm:$0xff] }
  0x31   :  { %234 = vmatpush.msra.mxu2 %v184_v46  ;;  %257 = vmatpush.msra.mxu3 %v185_v47  ;;  %v374_v21 = vld [vmem:[#allocation9 + $0xb0] sm:$0xff]  ;;  %v373_v24 = vld [vmem:[#allocation9 + $0xa8] sm:$0xff]  ;;  %v356_v27 = vld [vmem:[#allocation9 + $0x20] sm:$0xff] }
  0x32   :  { %148 = vmatpush.msra.mxu0 %v104_v57  ;;  %171 = vmatpush.msra.mxu1 %v105_v58  ;;  %v214_v22 = vld [vmem:[%s778_s4] sm:$0x3]  ;;  %v372_v28 = vld [vmem:[#allocation9 + $0xa0] sm:$0xff]  ;;  %v355_v29 = vld [vmem:[#allocation9 + $0x18] sm:$0xff] }
  0x33   :  { %235 = vmatpush.msra.mxu2 %v182_v50  ;;  %258 = vmatpush.msra.mxu3 %v183_v51  ;;  %v216_v25 = vperm.slane %v214_v22, 0  ;;  %v217_v26 = vperm.slane %v214_v22, 1  ;;  %v371_v30 = vld [vmem:[#allocation9 + $0x98] sm:$0xff]  ;;  %v354_v35 = vld [vmem:[#allocation9 + $0x10] sm:$0xff]  ;;  %v353_v39 = vld [vmem:[#allocation9 + $0x8] sm:$0xff] }
  0x34   :  { %236 = vmatmul.f32.vlgmr.msra.gmra.mxu2 %v96_v52  ;;  %259 = vmatmul.f32.vlgmr.msra.gmra.mxu3 %v96_v52  ;;  %v370_v36 = vld [vmem:[#allocation9 + $0x90] sm:$0xff]  ;;  %v369_v40 = vld [vmem:[#allocation9 + $0x88] sm:$0xff]  ;;  %v352_v41 = vld [vmem:[#allocation9] sm:$0xff] }
  0x35   :  { %149 = vmatpush.msra.mxu0 %v102_v59  ;;  %172 = vmatpush.msra.mxu1 %v103_v60  ;;  %v368_v42 = vld [vmem:[#allocation9 + $0x80] sm:$0xff]  ;;  %v745_v58 = vld [vmem:[%s776_s2] sm:$0x3] }
  0x36   :  { %472 = vmatpush.msrb.mxu2 %v367_v2  ;;  %488 = vmatpush.msrb.mxu3 %v383_v3 }
  0x37   :  { %150 = vmatpush.msra.mxu0 %v100_v62  ;;  %173 = vmatpush.msra.mxu1 %v101_v63 }
  0x38   :  { %473 = vmatpush.msrb.mxu2 %v366_v4  ;;  %489 = vmatpush.msrb.mxu3 %v382_v5 }
  0x39   :  { %151 = vmatpush.msra.mxu0 %v98_v0  ;;  %174 = vmatpush.msra.mxu1 %v99_v1 }
  0x3a   :  { %152 = vmatmul.f32.vlgmr.msra.gmra.mxu0 %v96_v52  ;;  %175 = vmatmul.f32.vlgmr.msra.gmra.mxu1 %v96_v52 }
  0x3b   :  { %384 = vmatpush.msrb.mxu0 %v367_v2  ;;  %407 = vmatpush.msrb.mxu1 %v383_v3  ;;  %v132_v2 = vperm.slane %v745_v58, 0 }
  0x3c   :  { %239 = vmatmul.f32.gmra.mxu2 %v97_v61  ;;  %262 = vmatmul.f32.gmra.mxu3 %v97_v61 }
  0x3d   :  { %385 = vmatpush.msrb.mxu0 %v366_v4  ;;  %408 = vmatpush.msrb.mxu1 %v382_v5 }
  0x3e   :  { %474 = vmatpush.msrb.mxu2 %v365_v6  ;;  %490 = vmatpush.msrb.mxu3 %v381_v7 }
  0x3f   :  { %386 = vmatpush.msrb.mxu0 %v365_v6  ;;  %409 = vmatpush.msrb.mxu1 %v381_v7 }
  0x40   :  { %475 = vmatpush.msrb.mxu2 %v364_v8  ;;  %491 = vmatpush.msrb.mxu3 %v380_v9 }
  0x41   :  { %387 = vmatpush.msrb.mxu0 %v364_v8  ;;  %410 = vmatpush.msrb.mxu1 %v380_v9  ;;  %v133_v8 = vperm.slane %v745_v58, 1 }
  0x42   :  { %155 = vmatmul.f32.gmra.mxu0 %v97_v61  ;;  %178 = vmatmul.f32.gmra.mxu1 %v97_v61 }
  0x43   :  { %388 = vmatpush.msrb.mxu0 %v363_v10  ;;  %411 = vmatpush.msrb.mxu1 %v379_v11 }
  0x44   :  { %476 = vmatpush.msrb.mxu2 %v363_v10  ;;  %492 = vmatpush.msrb.mxu3 %v379_v11 }
  0x45   :  { %389 = vmatpush.msrb.mxu0 %v362_v12  ;;  %412 = vmatpush.msrb.mxu1 %v378_v13 }
  0x46   :  { %477 = vmatpush.msrb.mxu2 %v362_v12  ;;  %493 = vmatpush.msrb.mxu3 %v378_v13 }
  0x47   :  { %390 = vmatpush.msrb.mxu0 %v361_v14  ;;  %413 = vmatpush.msrb.mxu1 %v377_v15 }
  0x48   :  { %478 = vmatpush.msrb.mxu2 %v361_v14  ;;  %494 = vmatpush.msrb.mxu3 %v377_v15 }
  0x49   :  { %391 = vmatpush.msrb.mxu0 %v360_v16  ;;  %414 = vmatpush.msrb.mxu1 %v376_v17 }
  0x4a   :  { %479 = vmatpush.msrb.mxu2 %v360_v16  ;;  %495 = vmatpush.msrb.mxu3 %v376_v17 }
  0x4b   :  { %392 = vmatpush.msrb.mxu0 %v359_v18  ;;  %415 = vmatpush.msrb.mxu1 %v375_v19 }
  0x4c   :  { %480 = vmatpush.msrb.mxu2 %v359_v18  ;;  %496 = vmatpush.msrb.mxu3 %v375_v19 }
  0x4d   :  { %393 = vmatpush.msrb.mxu0 %v358_v20  ;;  %416 = vmatpush.msrb.mxu1 %v374_v21 }
  0x4e   :  { %481 = vmatpush.msrb.mxu2 %v358_v20  ;;  %497 = vmatpush.msrb.mxu3 %v374_v21 }
  0x4f   :  { %394 = vmatpush.msrb.mxu0 %v357_v23  ;;  %417 = vmatpush.msrb.mxu1 %v373_v24 }
  0x50   :  { %482 = vmatpush.msrb.mxu2 %v357_v23  ;;  %498 = vmatpush.msrb.mxu3 %v373_v24 }
  0x51   :  { %395 = vmatpush.msrb.mxu0 %v356_v27  ;;  %418 = vmatpush.msrb.mxu1 %v372_v28 }
  0x52   :  { %483 = vmatpush.msrb.mxu2 %v356_v27  ;;  %499 = vmatpush.msrb.mxu3 %v372_v28 }
  0x53   :  { %396 = vmatpush.msrb.mxu0 %v355_v29  ;;  %419 = vmatpush.msrb.mxu1 %v371_v30 }
  0x54   :  { %484 = vmatpush.msrb.mxu2 %v355_v29  ;;  %500 = vmatpush.msrb.mxu3 %v371_v30 }
  0x55   :  { %397 = vmatpush.msrb.mxu0 %v354_v35  ;;  %420 = vmatpush.msrb.mxu1 %v370_v36 }
  0x56   :  { %485 = vmatpush.msrb.mxu2 %v354_v35  ;;  %501 = vmatpush.msrb.mxu3 %v370_v36 }
  0x57   :  { %398 = vmatpush.msrb.mxu0 %v353_v39  ;;  %421 = vmatpush.msrb.mxu1 %v369_v40 }
  0x58   :  { %486 = vmatpush.msrb.mxu2 %v353_v39  ;;  %502 = vmatpush.msrb.mxu3 %v369_v40 }
  0x59   :  { %399 = vmatpush.msrb.mxu0 %v352_v41  ;;  %422 = vmatpush.msrb.mxu1 %v368_v42 }
  0x5a   :  { %487 = vmatpush.msrb.mxu2 %v352_v41  ;;  %503 = vmatpush.msrb.mxu3 %v368_v42 }
  0xb7   :  { %v237_v31 = vpop.f32.mrf.mxu2  ;;  %v260_v32 = vpop.f32.mrf.mxu3 }
  0xb8   :  { %v728_v33 = vadd.f32 %v237_v31, %v216_v25  ;;  %v730_v34 = vadd.f32 %v260_v32, %v217_v26  ;;  %v153_v3 = vpop.f32.mrf.mxu0  ;;  %v176_v10 = vpop.f32.mrf.mxu1 }
  0xb9   :  { %v154_v14 = vadd.f32 %v153_v3, %v132_v2  ;;  %v177_v20 = vadd.f32 %v176_v10, %v133_v8 }
  0xba   :  { %v468_v37 = vmul.f32 -1.442695, %v728_v33  ;;  %v469_v38 = vmul.f32 -1.442695, %v730_v34 }
  0xbc   :  { %514 = vpow2.f32 %v468_v37 }
  0xbd   :  { %516 = vpow2.f32 %v469_v38 }
  0xbf   :  { %v240_v43 = vpop.f32.mrf.mxu2  ;;  %v263_v44 = vpop.f32.mrf.mxu3 }
  0xc0   :  { %v734_v45 = vadd.f32 %v240_v43, %v216_v25  ;;  %v736_v46 = vadd.f32 %v263_v44, %v217_v26  ;;  %v156_v35 = vpop.f32.mrf.mxu0  ;;  %v179_v41 = vpop.f32.mrf.mxu1 }
  0xc1   :  { %v157_v40 = vadd.f32 %v156_v35, %v132_v2 }
  0xc2   :  { %v515_v47 = vpop.eup %514  ;;  %v470_v48 = vmul.f32 -1.442695, %v734_v45  ;;  %v471_v51 = vmul.f32 -1.442695, %v736_v46 }
  0xc3   :  { %v517_v49 = vpop.eup %516  ;;  %v278_v50 = vadd.f32 1.0, %v515_v47 }
  0xc4   :  { %v279_v52 = vadd.f32 1.0, %v517_v49  ;;  %518 = vpow2.f32 %v470_v48  ;;  %v180_v49 = vadd.f32 %v179_v41, %v133_v8 }
  0xc5   :  { %520 = vrcp.f32 %v278_v50  ;;  %v291_v63 = vand.u32 2147483647, %v278_v50  ;;  %v293_v0 = vand.u32 2147483648, %v278_v50  ;;  %vm287_vm2 = vweird.f32 %v278_v50 }
  0xc6   :  { %522 = vrcp.f32 %v279_v52  ;;  %v308_v5 = vand.u32 2147483648, %v279_v52  ;;  %v306_v7 = vand.u32 2147483647, %v279_v52  ;;  %vm302_vm4 = vweird.f32 %v279_v52 }
  0xc7   :  { %524 = vpow2.f32 %v471_v51  ;;  %v294_v12 = vor.u32 1.1754944e-38, %v293_v0  ;;  %vm292_vm5 = vcmp.eq.f32.partialorder %v291_v63, 8.507059e+37 }
  0xc8   :  { %v309_v16 = vor.u32 1.1754944e-38, %v308_v5  ;;  %vm307_vm7 = vcmp.eq.f32.partialorder %v306_v7, 8.507059e+37 }
  0xca   :  { %v519_v53 = vpop.eup %518 }
  0xcb   :  { %v521_v54 = vpop.eup %520  ;;  %v740_v55 = vadd.f32 1.0, %v519_v53 }
  0xcc   :  { %v523_v56 = vpop.eup %522  ;;  %v283_v57 = vmul.f32 %v521_v54, %v278_v50  ;;  %vm288_vm0 = vweird.f32 %v521_v54 }
  0xcd   :  { %v525_v59 = vpop.eup %524  ;;  %v298_v60 = vmul.f32 %v523_v56, %v279_v52  ;;  %526 = vrcp.f32 %v740_v55  ;;  %vm303_vm1 = vweird.f32 %v523_v56  ;;  %vm289_vm3 = vmor %vm287_vm2, %vm288_vm0  ;;  %v323_v26 = vand.u32 2147483648, %v740_v55 }
  0xce   :  { %v284_v61 = vsub.f32 1.0, %v283_v57  ;;  %v748_v62 = vadd.f32 1.0, %v525_v59  ;;  %vm304_vm6 = vmor %vm302_vm4, %vm303_vm1  ;;  %v321_v29 = vand.u32 2147483647, %v740_v55  ;;  %vm317_vm9 = vweird.f32 %v740_v55 }
  0xcf   :  { %v299_v1 = vsub.f32 1.0, %v298_v60 }
  0xd0   :  { %v285_v4 = vmul.f32 %v521_v54, %v284_v61  ;;  %528 = vrcp.f32 %v748_v62  ;;  %v336_v38 = vand.u32 2147483647, %v748_v62  ;;  %vm322_vm12 = vcmp.eq.f32.partialorder %v321_v29, 8.507059e+37 }
  0xd1   :  { %v300_v6 = vmul.f32 %v523_v56, %v299_v1  ;;  %vm332_vm13 = vweird.f32 %v748_v62 }
  0xd2   :  { %v286_v9 = vadd.f32 %v521_v54, %v285_v4  ;;  %vm337_vm15 = vcmp.eq.f32.partialorder %v336_v38, 8.507059e+37 }
  0xd3   :  { %v527_v11 = vpop.eup %526  ;;  %v301_v13 = vadd.f32 %v523_v56, %v300_v6 }
  0xd4   :  { %v290_v15 = vsel %vm289_vm3, %v521_v54, %v286_v9  ;;  %v313_v17 = vmul.f32 %v527_v11, %v740_v55  ;;  %vm318_vm8 = vweird.f32 %v527_v11  ;;  %v513_v55 = vld [vmem:[%s780_s6] ss:$0 sm:$0xff] }
  0xd5   :  { %v295_v18 = vsel %vm292_vm5, %v294_v12, %v290_v15  ;;  %v305_v19 = vsel %vm304_vm6, %v523_v56, %v301_v13  ;;  %vm319_vm10 = vmor %vm317_vm9, %vm318_vm8 }
  0xd6   :  { %v529_v21 = vpop.eup %528  ;;  %v342_v22 = vmul.f32 %v295_v18, %v728_v33  ;;  %v310_v23 = vsel %vm307_vm7, %v309_v16, %v305_v19  ;;  %v314_v24 = vsub.f32 1.0, %v313_v17  ;;  %v338_v33 = vand.u32 2147483648, %v748_v62 }
  0xd7   :  { %v343_v25 = vmul.f32 %v310_v23, %v730_v34  ;;  %v328_v27 = vmul.f32 %v529_v21, %v748_v62  ;;  %v324_v34 = vor.u32 1.1754944e-38, %v323_v26  ;;  %vm333_vm11 = vweird.f32 %v529_v21 }
  0xd8   :  { %v315_v28 = vmul.f32 %v527_v11, %v314_v24  ;;  %v346_v30 = vmul.f32 %v342_v22, %v154_v14  ;;  %vm334_vm14 = vmor %vm332_vm13, %vm333_vm11  ;;  %v339_v47 = vor.u32 1.1754944e-38, %v338_v33 }
  0xd9   :  { %v329_v31 = vsub.f32 1.0, %v328_v27  ;;  %v347_v32 = vmul.f32 %v343_v25, %v177_v20 }
  0xda   :  { %v316_v36 = vadd.f32 %v527_v11, %v315_v28  ;;  %400 = vmatmul.f32.vlgmr.msrb.gmra.mxu0 %v346_v30 }
  0xdb   :  { %v330_v37 = vmul.f32 %v529_v21, %v329_v31  ;;  %423 = vmatmul.f32.vlgmr.msrb.gmra.mxu1 %v347_v32 }
  0xdc   :  { %v320_v39 = vsel %vm319_vm10, %v527_v11, %v316_v36 }
  0xdd   :  { %v325_v42 = vsel %vm322_vm12, %v324_v34, %v320_v39  ;;  %v331_v43 = vadd.f32 %v529_v21, %v330_v37 }
  0xde   :  { %v344_v44 = vmul.f32 %v325_v42, %v734_v45 }
  0xdf   :  { %v335_v48 = vsel %vm334_vm14, %v529_v21, %v331_v43 }
  0xe0   :  { %v340_v50 = vsel %vm337_vm15, %v339_v47, %v335_v48  ;;  %v348_v51 = vmul.f32 %v344_v44, %v157_v40 }
  0xe1   :  { %v345_v52 = vmul.f32 %v340_v50, %v736_v46 }
  0xe2   :  { %403 = vmatmul.f32.vlgmr.msrb.gmra.mxu2 %v348_v51 }
  0xe3   :  { %v349_v53 = vmul.f32 %v345_v52, %v180_v49 }
  0xe5   :  { %426 = vmatmul.f32.vlgmr.msrb.gmra.mxu3 %v349_v53 }
 0x157   :  { %v401_v54 = vpop.f32.mrf.mxu0 }
 0x158   :  { %v424_v56 = vpop.f32.mrf.mxu1 }
 0x159   :  { %v425_v57 = vadd.f32 %v424_v56, %v401_v54 }
 0x15b   :  { %v443_v45 = vadd.f32 %v513_v55, %v425_v57 }
 0x15d   :  { %445 = vst [vmem:[#allocation11] sm:$0xff] %v443_v45 }
 0x165   :  { %v404_v58 = vpop.f32.mrf.mxu2 }
 0x168   :  { %v427_v59 = vpop.f32.mrf.mxu3 }
 0x169   :  { %v428_v46 = vadd.f32 %v427_v59, %v404_v58 }
 0x16b   :  { %v444_v60 = vadd.f32 %v513_v55, %v428_v46 }
 0x16d   :  { %446 = vst [vmem:[#allocation11 + $0x8] sm:$0xff] %v444_v60 }
 0x16e   :  { %459 = dma.vmem_to_hbm [thread:$0]  %s452_s26, 256, %s454_s29, [#allocation5], %s662_s13, %s662_s13, %s663_s14  }
 0x16f   :  { %656 = dma.done.wait [#allocation5], 256  }
 0x170   :  { %657 = vsyncadd [#allocation5], 4294967040 }
 0x171   :  { %464 = vsyncpa [#allocation4], 1 }
 0x172   :  { %465 = vsyncpa [#allocation7], 1 }
 0x173   :  { %466 = vsyncpa [#allocation10], 1 }
 0x174   :  { %467 = vsyncpa [#allocation5], 1 }

</bundles_post_ra>
